<compile_context>
chip_gen: v6e
topology: v6e:2x2x1
jax: 0.10.0
libtpu: 0.0.40
codegen_flags: <defaults>
</compile_context>

<pallas_src>
import functools

import jax
import jax.numpy as jnp
from jax.experimental import pallas as pl
from jax.experimental.pallas import tpu as pltpu

_LANE = 128      # lane width -> feature-dim padding granularity
_SUBLANE = 8     # f32 sublane -> batch-tile granularity


def _round_up(x, m):
    return ((x + m - 1) // m) * m


# ----------------------------------------------------------------------------
# Kernel
# ----------------------------------------------------------------------------
def mlp_actor_kernel(x_ref, w1_ref, b1_ref, w2_ref, b2_ref, w3_ref, b3_ref,
                     out_ref, *, act_limit):
    # Hidden layer 1: Linear (bf16 MXU inputs, f32 accumulation) + ReLU (f32).
    x = x_ref[...].astype(jnp.bfloat16)
    h = jnp.dot(x, w1_ref[...], preferred_element_type=jnp.float32) + b1_ref[...]
    h = jnp.maximum(h, 0.0)
    # Hidden layer 2.
    h = jnp.dot(h.astype(jnp.bfloat16), w2_ref[...],
                preferred_element_type=jnp.float32) + b2_ref[...]
    h = jnp.maximum(h, 0.0)
    # Output layer: Linear + Tanh (output_activation of the MLP).
    y = jnp.dot(h.astype(jnp.bfloat16), w3_ref[...],
                preferred_element_type=jnp.float32) + b3_ref[...]
    y = jnp.tanh(y)
    if act_limit:                 # mirrors PyTorch `if self.act_limit:`
        y = act_limit * y         # fused post-tanh scale (cannot fold into w3)
    out_ref[...] = y.astype(out_ref.dtype)   # lane-dense (padded-to-128) store


# ----------------------------------------------------------------------------
# Wrapper
# ----------------------------------------------------------------------------
def mlp_actor_forward(obs, padded_params, act_dim, act_limit=None,
                      *, block_batch=512):
    """obs: [batch, obs_dim] f32.  padded_params: ((w1,b1),(w2,b2),(w3,b3))
    with w_i bf16 [in_p, out_p] (feature dims padded to multiples of 128) and
    b_i f32 [1, out_p].  Returns [batch, act_dim] in obs.dtype."""
    (w1, b1), (w2, b2), (w3, b3) = padded_params
    batch, obs_dim = obs.shape
    obs_p, h1_p = w1.shape
    _, h2_p = w2.shape
    _, act_p = w3.shape

    # Batch tile: as large as reasonable (review: 512-2048), multiple of 8.
    tb = min(block_batch, _round_up(batch, _SUBLANE))
    batch_p = _round_up(batch, tb)

    # Zero-pad obs to [batch_p, obs_p] (zeros feed zero-padded weight rows).
    x = jnp.zeros((batch_p, obs_p), obs.dtype).at[:batch, :obs_dim].set(obs)

    kernel = functools.partial(mlp_actor_kernel, act_limit=act_limit)

    out = pl.pallas_call(
        kernel,
        out_shape=jax.ShapeDtypeStruct((batch_p, act_p), obs.dtype),
        grid_spec=pltpu.PrefetchScalarGridSpec(
            num_scalar_prefetch=0,
            grid=(batch_p // tb,),
            in_specs=[
                # obs: one batch tile per grid step (pipelined / double-buffered)
                pl.BlockSpec((tb, obs_p), lambda i: (i, 0)),
                # weights & biases: resident in VMEM across all grid steps
                pl.BlockSpec((obs_p, h1_p), lambda i: (0, 0)),
                pl.BlockSpec((1, h1_p), lambda i: (0, 0)),
                pl.BlockSpec((h1_p, h2_p), lambda i: (0, 0)),
                pl.BlockSpec((1, h2_p), lambda i: (0, 0)),
                pl.BlockSpec((h2_p, act_p), lambda i: (0, 0)),
                pl.BlockSpec((1, act_p), lambda i: (0, 0)),
            ],
            out_specs=pl.BlockSpec((tb, act_p), lambda i: (i, 0)),
        ),
        compiler_params=pltpu.CompilerParams(
            dimension_semantics=("parallel",)),   # megacore on v7x
    )(x, w1, b1, w2, b2, w3, b3)

    return out[:batch, :act_dim]


# ----------------------------------------------------------------------------
# Parameter construction
# ----------------------------------------------------------------------------
def init_mlp_actor_params(key, obs_dim, hidden_sizes, act_dim):
    """Deterministic init mimicking torch.nn.Linear default
    (U[-1/sqrt(fan_in), +1/sqrt(fan_in)]).  Unpadded f32, w: [in, out]."""
    sizes = [obs_dim] + list(hidden_sizes) + [act_dim]
    params = []
    for fan_in, fan_out in zip(sizes[:-1], sizes[1:]):
        key, kw, kb = jax.random.split(key, 3)
        bound = 1.0 / jnp.sqrt(jnp.float32(fan_in))
        w = jax.random.uniform(kw, (fan_in, fan_out), jnp.float32, -bound, bound)
        b = jax.random.uniform(kb, (1, fan_out), jnp.float32, -bound, bound)
        params.append((w, b))
    return tuple(params)


def build_padded_params(params, compute_dtype=jnp.bfloat16):
    """Zero-pad every feature dim to a multiple of 128 (lane-dense, unmasked
    loads/stores, full MXU passes) and cast weights to the MXU input dtype.
    Zero padding is exact: padded inputs/hidden units stay 0 through
    Linear+ReLU and the padded output columns are sliced away."""
    padded = []
    for w, b in params:
        fi, fo = w.shape
        fi_p, fo_p = _round_up(fi, _LANE), _round_up(fo, _LANE)
        wp = jnp.zeros((fi_p, fo_p), compute_dtype).at[:fi, :fo].set(
            w.astype(compute_dtype))
        bp = jnp.zeros((1, fo_p), jnp.float32).at[:, :fo].set(
            b.astype(jnp.float32))
        padded.append((wp, bp))
    return tuple(padded)


# ----------------------------------------------------------------------------
# References for correctness checking
# ----------------------------------------------------------------------------
def mlp_actor_ref_f32(obs, params, act_limit=None):
    """Pure f32 reference (matches the PyTorch module's math)."""
    (w1, b1), (w2, b2), (w3, b3) = params
    h = jnp.maximum(obs @ w1 + b1, 0.0)
    h = jnp.maximum(h @ w2 + b2, 0.0)
    y = jnp.tanh(h @ w3 + b3)
    return act_limit * y if act_limit else y


def mlp_actor_ref_matched(obs, padded_params, act_dim, act_limit=None):
    """Pure-JAX reference with the same numerics as the kernel
    (bf16 matmul inputs, f32 accumulation)."""
    (w1, b1), (w2, b2), (w3, b3) = padded_params
    batch, obs_dim = obs.shape
    obs_p = w1.shape[0]
    x = jnp.zeros((batch, obs_p), obs.dtype).at[:, :obs_dim].set(obs)
    h = jnp.maximum(jnp.dot(x.astype(jnp.bfloat16), w1,
                            preferred_element_type=jnp.float32) + b1, 0.0)
    h = jnp.maximum(jnp.dot(h.astype(jnp.bfloat16), w2,
                            preferred_element_type=jnp.float32) + b2, 0.0)
    y = jnp.tanh(jnp.dot(h.astype(jnp.bfloat16), w3,
                         preferred_element_type=jnp.float32) + b3)
    if act_limit:
        y = act_limit * y
    return y[:, :act_dim]


# ----------------------------------------------------------------------------
if __name__ == "__main__":
    obs_dim, act_dim = 16, 8
    hidden_sizes = (32, 32)
    batch = 8
    act_limit = 2.0

    key = jax.random.PRNGKey(0)
    key, kobs = jax.random.split(key)
    obs = jax.random.normal(kobs, (batch, obs_dim), jnp.float32)

    params = init_mlp_actor_params(key, obs_dim, hidden_sizes, act_dim)
    padded_params = build_padded_params(params)

    out = mlp_actor_forward(obs, padded_params, act_dim, act_limit=act_limit)
    out = jax.block_until_ready(out)
    assert out.shape == (batch, act_dim)

    # Tight check vs a reference with identical (bf16-input, f32-acc) numerics.
    ref_matched = mlp_actor_ref_matched(obs, padded_params, act_dim,
                                        act_limit=act_limit)
    assert jnp.allclose(out, ref_matched, atol=1e-4, rtol=1e-4), (
        jnp.max(jnp.abs(out - ref_matched)))

    # Loose check vs the exact f32 PyTorch-equivalent math (bf16 rounding).
    ref_f32 = mlp_actor_ref_f32(obs, params, act_limit=act_limit)
    assert jnp.allclose(out, ref_f32, atol=2e-2, rtol=2e-2), (
        jnp.max(jnp.abs(out - ref_f32)))

    print("KERNEL_OK")
</pallas_src>

<mosaic_0001>
module attributes {stable_mosaic.version = 11 : i64} {
  func.func @mlp_actor_kernel(%arg0: i32, %arg1: memref<8x128xf32, #tpu.memory_space<vmem>>, %arg2: memref<128x128xbf16, #tpu.memory_space<vmem>>, %arg3: memref<1x128xf32, #tpu.memory_space<vmem>>, %arg4: memref<128x128xbf16, #tpu.memory_space<vmem>>, %arg5: memref<1x128xf32, #tpu.memory_space<vmem>>, %arg6: memref<128x128xbf16, #tpu.memory_space<vmem>>, %arg7: memref<1x128xf32, #tpu.memory_space<vmem>>, %arg8: memref<8x128xf32, #tpu.memory_space<vmem>>) attributes {dimension_semantics = [#tpu.dimension_semantics<parallel>], iteration_bounds = array<i64: 1>, scalar_prefetch = 0 : i64, scratch_operands = 0 : i64, tpu.core_type = #tpu.core_type<tc>, window_params = [{transform_indices = @transform_0, window_bounds = array<i64: 8, 128>}, {pipeline_mode = #tpu.pipeline_mode<synchronous>, transform_indices = @transform_1, window_bounds = array<i64: 128, 128>}, {pipeline_mode = #tpu.pipeline_mode<synchronous>, transform_indices = @transform_2, window_bounds = array<i64: 1, 128>}, {pipeline_mode = #tpu.pipeline_mode<synchronous>, transform_indices = @transform_3, window_bounds = array<i64: 128, 128>}, {pipeline_mode = #tpu.pipeline_mode<synchronous>, transform_indices = @transform_4, window_bounds = array<i64: 1, 128>}, {pipeline_mode = #tpu.pipeline_mode<synchronous>, transform_indices = @transform_5, window_bounds = array<i64: 128, 128>}, {pipeline_mode = #tpu.pipeline_mode<synchronous>, transform_indices = @transform_6, window_bounds = array<i64: 1, 128>}, {transform_indices = @transform_7, window_bounds = array<i64: 8, 128>}]} {
    %c0 = arith.constant 0 : index
    %c0_0 = arith.constant 0 : index
    %0 = vector.load %arg1[%c0, %c0_0] : memref<8x128xf32, #tpu.memory_space<vmem>>, vector<8x128xf32>
    %1 = arith.truncf %0 : vector<8x128xf32> to vector<8x128xbf16>
    %c0_1 = arith.constant 0 : index
    %c0_2 = arith.constant 0 : index
    %2 = vector.load %arg2[%c0_1, %c0_2] : memref<128x128xbf16, #tpu.memory_space<vmem>>, vector<128x128xbf16>
    %cst = arith.constant dense<0.000000e+00> : vector<8x128xf32>
    %3 = tpu.matmul %1, %2, %cst {dimension_numbers = #tpu.dot_dimension_numbers<[1], [0], [0], [1], [0, 0, 1, 1], [], []>} : vector<8x128xbf16>, vector<128x128xbf16>, vector<8x128xf32> -> vector<8x128xf32>
    %c0_3 = arith.constant 0 : index
    %c0_4 = arith.constant 0 : index
    %4 = vector.load %arg3[%c0_3, %c0_4] : memref<1x128xf32, #tpu.memory_space<vmem>>, vector<1x128xf32>
    %5 = vector.broadcast %4 : vector<1x128xf32> to vector<8x128xf32>
    %6 = arith.addf %3, %5 : vector<8x128xf32>
    %cst_5 = arith.constant 0.000000e+00 : f32
    %7 = vector.broadcast %cst_5 : f32 to vector<8x128xf32>
    %8 = arith.maximumf %6, %7 : vector<8x128xf32>
    %9 = arith.truncf %8 : vector<8x128xf32> to vector<8x128xbf16>
    %c0_6 = arith.constant 0 : index
    %c0_7 = arith.constant 0 : index
    %10 = vector.load %arg4[%c0_6, %c0_7] : memref<128x128xbf16, #tpu.memory_space<vmem>>, vector<128x128xbf16>
    %cst_8 = arith.constant dense<0.000000e+00> : vector<8x128xf32>
    %11 = tpu.matmul %9, %10, %cst_8 {dimension_numbers = #tpu.dot_dimension_numbers<[1], [0], [0], [1], [0, 0, 1, 1], [], []>} : vector<8x128xbf16>, vector<128x128xbf16>, vector<8x128xf32> -> vector<8x128xf32>
    %c0_9 = arith.constant 0 : index
    %c0_10 = arith.constant 0 : index
    %12 = vector.load %arg5[%c0_9, %c0_10] : memref<1x128xf32, #tpu.memory_space<vmem>>, vector<1x128xf32>
    %13 = vector.broadcast %12 : vector<1x128xf32> to vector<8x128xf32>
    %14 = arith.addf %11, %13 : vector<8x128xf32>
    %cst_11 = arith.constant 0.000000e+00 : f32
    %15 = vector.broadcast %cst_11 : f32 to vector<8x128xf32>
    %16 = arith.maximumf %14, %15 : vector<8x128xf32>
    %17 = arith.truncf %16 : vector<8x128xf32> to vector<8x128xbf16>
    %c0_12 = arith.constant 0 : index
    %c0_13 = arith.constant 0 : index
    %18 = vector.load %arg6[%c0_12, %c0_13] : memref<128x128xbf16, #tpu.memory_space<vmem>>, vector<128x128xbf16>
    %cst_14 = arith.constant dense<0.000000e+00> : vector<8x128xf32>
    %19 = tpu.matmul %17, %18, %cst_14 {dimension_numbers = #tpu.dot_dimension_numbers<[1], [0], [0], [1], [0, 0, 1, 1], [], []>} : vector<8x128xbf16>, vector<128x128xbf16>, vector<8x128xf32> -> vector<8x128xf32>
    %c0_15 = arith.constant 0 : index
    %c0_16 = arith.constant 0 : index
    %20 = vector.load %arg7[%c0_15, %c0_16] : memref<1x128xf32, #tpu.memory_space<vmem>>, vector<1x128xf32>
    %21 = vector.broadcast %20 : vector<1x128xf32> to vector<8x128xf32>
    %22 = arith.addf %19, %21 : vector<8x128xf32>
    %23 = math.tanh %22 : vector<8x128xf32>
    %cst_17 = arith.constant 2.000000e+00 : f32
    %24 = vector.broadcast %cst_17 : f32 to vector<8x128xf32>
    %25 = arith.mulf %24, %23 : vector<8x128xf32>
    %c0_18 = arith.constant 0 : index
    %c0_19 = arith.constant 0 : index
    %26 = vector.load %arg8[%c0_18, %c0_19] : memref<8x128xf32, #tpu.memory_space<vmem>>, vector<8x128xf32>
    tpu.vector_store %arg8[%c0_18, %c0_19], %25 {strides = array<i32>} : memref<8x128xf32, #tpu.memory_space<vmem>>, vector<8x128xf32>,
    return
  }
  func.func @transform_0(%arg0: i32) -> (i32, i32) {
    %c0_i32 = arith.constant 0 : i32
    %c0_i32_0 = arith.constant 0 : i32
    return %arg0, %c0_i32 : i32, i32
  }
  func.func @transform_1(%arg0: i32) -> (i32, i32) {
    %c0_i32 = arith.constant 0 : i32
    %c0_i32_0 = arith.constant 0 : i32
    %c0_i32_1 = arith.constant 0 : i32
    return %c0_i32, %c0_i32_0 : i32, i32
  }
  func.func @transform_2(%arg0: i32) -> (i32, i32) {
    %c0_i32 = arith.constant 0 : i32
    %c0_i32_0 = arith.constant 0 : i32
    %c0_i32_1 = arith.constant 0 : i32
    return %c0_i32, %c0_i32_0 : i32, i32
  }
  func.func @transform_3(%arg0: i32) -> (i32, i32) {
    %c0_i32 = arith.constant 0 : i32
    %c0_i32_0 = arith.constant 0 : i32
    %c0_i32_1 = arith.constant 0 : i32
    return %c0_i32, %c0_i32_0 : i32, i32
  }
  func.func @transform_4(%arg0: i32) -> (i32, i32) {
    %c0_i32 = arith.constant 0 : i32
    %c0_i32_0 = arith.constant 0 : i32
    %c0_i32_1 = arith.constant 0 : i32
    return %c0_i32, %c0_i32_0 : i32, i32
  }
  func.func @transform_5(%arg0: i32) -> (i32, i32) {
    %c0_i32 = arith.constant 0 : i32
    %c0_i32_0 = arith.constant 0 : i32
    %c0_i32_1 = arith.constant 0 : i32
    return %c0_i32, %c0_i32_0 : i32, i32
  }
  func.func @transform_6(%arg0: i32) -> (i32, i32) {
    %c0_i32 = arith.constant 0 : i32
    %c0_i32_0 = arith.constant 0 : i32
    %c0_i32_1 = arith.constant 0 : i32
    return %c0_i32, %c0_i32_0 : i32, i32
  }
  func.func @transform_7(%arg0: i32) -> (i32, i32) {
    %c0_i32 = arith.constant 0 : i32
    %c0_i32_0 = arith.constant 0 : i32
    return %arg0, %c0_i32 : i32, i32
  }
}

</mosaic_0001>

<bundles_post_ra>
// kernel: tpu_custom_call.1
= control target key start
LH: loop header
LB: loop body
LE: loop exit
PB: predicated region body
PF: predicated region fallthrough
CT: control target
= control target key end

     0   :  { %12 = vsyncpa [#allocation3], 0  ;;  %s809_s0 = inlined_call_operand.hbm [shape: f32[8,128], index: 0, kind: input, shape index: {}]   ;;  %s810_s1 = inlined_call_operand.hbm [shape: bf16[128,128], index: 1, kind: input, shape index: {}]   ;;  %s811_s2 = inlined_call_operand.vmem [shape: f32[1,128], index: 2, kind: input, shape index: {}]   ;;  %s812_s3 = inlined_call_operand.hbm [shape: bf16[128,128], index: 3, kind: input, shape index: {}]   ;;  %s813_s4 = inlined_call_operand.vmem [shape: f32[1,128], index: 4, kind: input, shape index: {}]   ;;  %s814_s5 = inlined_call_operand.hbm [shape: bf16[128,128], index: 5, kind: input, shape index: {}]   ;;  %s815_s6 = inlined_call_operand.vmem [shape: f32[1,128], index: 6, kind: input, shape index: {}]   ;;  %s816_s7 = inlined_call_operand.hbm [shape: f32[8,128], index: 7, kind: output, shape index: {}]  }
   0x1   :  { %13 = vsyncpa [#allocation6], 0 }
   0x2   :  { %14 = vsyncpa [#allocation9], 0 }
   0x3   :  { %15 = vsyncpa [#allocation4], 0  ;;  %s697_s24 = smov [#allocation5]  }
   0x4   :  { %s31_s25 = sshll.u32 %s697_s24, 4  ;;  %s32_s25 = int_to_ptr.vmem [resolvable:$true] %s31_s25 }
   0x5   :  { %s597_s26 = scalar_lea.vmem %s32_s25, 1024  ;;  %p602_p1 = scmp.lt.s32.totalorder %s32_s25, %s32_s25 }
   0x6   :  { %p598_p0 = scmp.ne.s32.totalorder %s32_s25, %s597_s26  ;;  %p603_p2 = scmp.lt.s32.totalorder %s597_s26, %s597_s26 }
   0x8   :  { %p604_p3 = por %p603_p2, %p602_p1 }
   0xa   :  { %p605_p4 = pnand %p604_p3, %p598_p0 }
   0xc   :  { %608 = shalt.err (!%p605_p4)
}
   0xd   :  { %s698_s27 = smov 64   ;;  %s699_s28 = smov 4  }
   0xe   :  { %37 = dma.hbm_to_vmem [thread:$0]  %s810_s1, 1024, %s32_s25, [#allocation6], %s698_s27, %s698_s27, %s699_s28  }
   0xf   :  { %s700_s8 = smov [#allocation2]   ;;  %s701_s10 = smov [#allocation7]  }
  0x10   :  { %s22_s9 = sshll.u32 %s700_s8, 4  ;;  %s45_s11 = sshll.u32 %s701_s10, 4  ;;  %s23_s9 = int_to_ptr.vmem [resolvable:$true] %s22_s9  ;;  %s46_s11 = int_to_ptr.vmem [resolvable:$true] %s45_s11 }
  0x11   :  { %s617_s12 = scalar_lea.vmem %s23_s9, 128  ;;  %p622_p6 = scmp.lt.s32.totalorder %s23_s9, %s23_s9 }
  0x12   :  { %p618_p5 = scmp.ne.s32.totalorder %s23_s9, %s617_s12  ;;  %p623_p7 = scmp.lt.s32.totalorder %s617_s12, %s617_s12 }
  0x14   :  { %p624_p8 = por %p623_p7, %p622_p6 }
  0x16   :  { %p625_p9 = pnand %p624_p8, %p618_p5 }
  0x18   :  { %628 = shalt.err (!%p625_p9)
}
  0x19   :  { %25 = dma.hbm_to_vmem [thread:$0]  %s809_s0, 128, %s23_s9, [#allocation3]  }
  0x1a   :  { %s637_s15 = scalar_lea.vmem %s46_s11, 1024  ;;  %p642_p11 = scmp.lt.s32.totalorder %s46_s11, %s46_s11 }
  0x1b   :  { %p638_p10 = scmp.ne.s32.totalorder %s46_s11, %s637_s15  ;;  %p643_p12 = scmp.lt.s32.totalorder %s637_s15, %s637_s15 }
  0x1d   :  { %p644_p13 = por %p643_p12, %p642_p11 }
  0x1f   :  { %p645_p0 = pnand %p644_p13, %p638_p10 }
  0x21   :  { %648 = shalt.err (!%p645_p0)
}
  0x22   :  { %51 = dma.hbm_to_vmem [thread:$0]  %s812_s3, 1024, %s46_s11, [#allocation6], %s698_s27, %s698_s27, %s699_s28  }
  0x23   :  { %s702_s17 = smov [#allocation8]  }
  0x24   :  { %s59_s18 = sshll.u32 %s702_s17, 4  ;;  %s60_s18 = int_to_ptr.vmem [resolvable:$true] %s59_s18 }
  0x25   :  { %s657_s19 = scalar_lea.vmem %s60_s18, 1024  ;;  %p662_p2 = scmp.lt.s32.totalorder %s60_s18, %s60_s18 }
  0x26   :  { %p658_p1 = scmp.ne.s32.totalorder %s60_s18, %s657_s19  ;;  %p663_p3 = scmp.lt.s32.totalorder %s657_s19, %s657_s19 }
  0x28   :  { %p664_p4 = por %p663_p3, %p662_p2 }
  0x2a   :  { %p665_p5 = pnand %p664_p4, %p658_p1 }
  0x2c   :  { %668 = shalt.err (!%p665_p5)
}
  0x2d   :  { %65 = dma.hbm_to_vmem [thread:$0]  %s814_s5, 1024, %s60_s18, [#allocation9], %s698_s27, %s698_s27, %s699_s28  }
  0x2e   :  { %689 = dma.done.wait [#allocation3], 128  }
  0x2f   :  { %690 = vsyncadd [#allocation3], 4294967168 }
  0x30   :  { %691 = dma.done.wait [#allocation6], 2048  }
  0x31   :  { %692 = vsyncadd [#allocation6], 4294965248 }
  0x32   :  { %693 = dma.done.wait [#allocation9], 1024  }
  0x33   :  { %694 = vsyncadd [#allocation9], 4294966272  ;;  %v703_v0 = vmov 0.0   ;;  %vm704_vm0 = vmmov 0   ;;  %v563_v1 = vld [vmem:[#allocation5 + $0x38] sm:$0xff]   ;;  %v564_v2 = vld [vmem:[#allocation5 + $0x30] sm:$0xff]  }
  0x34   :  { %494 = vmatprep.subr.bf16.mxu0 %v703_v0  ;;  %510 = vmatprep.mubr.msk.bf16.mxu0 %vm704_vm0, %v703_v0  ;;  %v565_v3 = vld [vmem:[#allocation5 + $0x28] sm:$0xff]   ;;  %v571_v4 = vld [vmem:[#allocation7 + $0x38] sm:$0xff]   ;;  %v566_v5 = vld [vmem:[#allocation5 + $0x20] sm:$0xff]   ;;  %s705_s24 = smov [#allocation10]  }
  0x35   :  { %514 = vmatprep.subr.bf16.mxu1 %v703_v0  ;;  %530 = vmatprep.mubr.msk.bf16.mxu1 %vm704_vm0, %v703_v0  ;;  %v572_v6 = vld [vmem:[#allocation7 + $0x30] sm:$0xff]   ;;  %v567_v7 = vld [vmem:[#allocation5 + $0x18] sm:$0xff]   ;;  %v573_v8 = vld [vmem:[#allocation7 + $0x28] sm:$0xff]  }
  0x36   :  { %495 = vmatpush3.bf16.msra.mxu0 %v563_v1  ;;  %515 = vmatpush3.bf16.msra.mxu1 %v571_v4  ;;  %v568_v9 = vld [vmem:[#allocation5 + $0x10] sm:$0xff]   ;;  %v574_v10 = vld [vmem:[#allocation7 + $0x20] sm:$0xff]   ;;  %v569_v11 = vld [vmem:[#allocation5 + $0x8] sm:$0xff]  }
  0x37   :  { %496 = vmatprep.subr.bf16.mxu0 %v703_v0  ;;  %516 = vmatprep.subr.bf16.mxu1 %v703_v0  ;;  %v575_v12 = vld [vmem:[#allocation7 + $0x18] sm:$0xff]   ;;  %v570_v13 = vld [vmem:[#allocation5] sm:$0xff]   ;;  %v576_v15 = vld [vmem:[#allocation7 + $0x10] sm:$0xff]  }
  0x38   :  { %v81_v14 = vld [vmem:[#allocation2] sm:$0xff]  ;;  %v577_v17 = vld [vmem:[#allocation7 + $0x8] sm:$0xff]   ;;  %v578_v18 = vld [vmem:[#allocation7] sm:$0xff]  }
  0x39   :  { %v82_v16 = vpack.c.bf16 %v81_v14, %v81_v14  ;;  %v579_v19 = vld [vmem:[#allocation8 + $0x38] sm:$0xff]   ;;  %v580_v20 = vld [vmem:[#allocation8 + $0x30] sm:$0xff]   ;;  %v581_v21 = vld [vmem:[#allocation8 + $0x28] sm:$0xff]  }
  0x3a   :  { %497 = vmatpush3.bf16.msra.mxu0 %v564_v2  ;;  %517 = vmatpush3.bf16.msra.mxu1 %v572_v6  ;;  %v582_v22 = vld [vmem:[#allocation8 + $0x20] sm:$0xff]   ;;  %v583_v23 = vld [vmem:[#allocation8 + $0x18] sm:$0xff]   ;;  %v584_v24 = vld [vmem:[#allocation8 + $0x10] sm:$0xff]  }
  0x3b   :  { %498 = vmatprep.subr.bf16.mxu0 %v703_v0  ;;  %518 = vmatprep.subr.bf16.mxu1 %v703_v0  ;;  %v440_v25 = vld [vmem:[%s811_s2] ss:$0 sm:$0xff]  ;;  %v585_v33 = vld [vmem:[#allocation8 + $0x8] sm:$0xff]   ;;  %v586_v34 = vld [vmem:[#allocation8] sm:$0xff]  }
  0x3c   :  { %v449_v35 = vld [vmem:[%s813_s4] ss:$0 sm:$0xff]  ;;  %s429_s4 = sshll.u32 %s705_s24, 4  ;;  %s430_s4 = int_to_ptr.vmem [resolvable:$true] %s429_s4 }
  0x3d   :  { %v458_v43 = vld [vmem:[%s815_s6] ss:$0 sm:$0xff]  ;;  %s669_s25 = scalar_lea.vmem %s430_s4, 128  ;;  %p674_p7 = scmp.lt.s32.totalorder %s430_s4, %s430_s4 }
  0x3e   :  { %499 = vmatpush3.bf16.msra.mxu0 %v565_v3  ;;  %519 = vmatpush3.bf16.msra.mxu1 %v573_v8  ;;  %p670_p6 = scmp.ne.s32.totalorder %s430_s4, %s669_s25  ;;  %p675_p8 = scmp.lt.s32.totalorder %s669_s25, %s669_s25 }
  0x3f   :  { %500 = vmatprep.subr.bf16.mxu0 %v703_v0  ;;  %520 = vmatprep.subr.bf16.mxu1 %v703_v0 }
  0x40   :  { %p676_p9 = por %p675_p8, %p674_p7 }
  0x42   :  { %501 = vmatpush3.bf16.msra.mxu0 %v566_v5  ;;  %521 = vmatpush3.bf16.msra.mxu1 %v574_v10  ;;  %p677_p10 = pnand %p676_p9, %p670_p6 }
  0x43   :  { %502 = vmatprep.subr.bf16.mxu0 %v703_v0  ;;  %522 = vmatprep.subr.bf16.mxu1 %v703_v0 }
  0x46   :  { %503 = vmatpush3.bf16.msra.mxu0 %v567_v7  ;;  %523 = vmatpush3.bf16.msra.mxu1 %v575_v12 }
  0x47   :  { %504 = vmatprep.subr.bf16.mxu0 %v703_v0  ;;  %524 = vmatprep.subr.bf16.mxu1 %v703_v0 }
  0x4a   :  { %505 = vmatpush3.bf16.msra.mxu0 %v568_v9  ;;  %525 = vmatpush3.bf16.msra.mxu1 %v576_v15 }
  0x4b   :  { %506 = vmatprep.subr.bf16.mxu0 %v703_v0  ;;  %526 = vmatprep.subr.bf16.mxu1 %v703_v0 }
  0x4e   :  { %507 = vmatpush3.bf16.msra.mxu0 %v569_v11  ;;  %527 = vmatpush3.bf16.msra.mxu1 %v577_v17 }
  0x4f   :  { %508 = vmatprep.subr.bf16.mxu0 %v703_v0  ;;  %528 = vmatprep.subr.bf16.mxu1 %v703_v0 }
  0x52   :  { %509 = vmatpush3.bf16.msra.mxu0 %v570_v13  ;;  %529 = vmatpush3.bf16.msra.mxu1 %v578_v18 }
  0x53   :  { %534 = vmatprep.subr.bf16.mxu0 %v703_v0 }
  0x55   :  { %511 = vmatmul.mubr.bf16.vlgmr.msra.gmra.mxu0 %v82_v16 }
  0x56   :  { %550 = vmatprep.mubr.msk.bf16.mxu0 %vm704_vm0, %v703_v0  ;;  %535 = vmatpush3.bf16.msra.mxu0 %v579_v19 }
  0x57   :  { %536 = vmatprep.subr.bf16.mxu0 %v703_v0 }
  0x5a   :  { %537 = vmatpush3.bf16.msra.mxu0 %v580_v20 }
  0x5b   :  { %538 = vmatprep.subr.bf16.mxu0 %v703_v0 }
  0x5e   :  { %539 = vmatpush3.bf16.msra.mxu0 %v581_v21 }
  0x5f   :  { %540 = vmatprep.subr.bf16.mxu0 %v703_v0 }
  0x62   :  { %541 = vmatpush3.bf16.msra.mxu0 %v582_v22 }
  0x63   :  { %542 = vmatprep.subr.bf16.mxu0 %v703_v0 }
  0x66   :  { %543 = vmatpush3.bf16.msra.mxu0 %v583_v23 }
  0x67   :  { %544 = vmatprep.subr.bf16.mxu0 %v703_v0 }
  0x6a   :  { %545 = vmatpush3.bf16.msra.mxu0 %v584_v24 }
  0x6b   :  { %546 = vmatprep.subr.bf16.mxu0 %v703_v0 }
  0x6e   :  { %547 = vmatpush3.bf16.msra.mxu0 %v585_v33 }
  0x6f   :  { %548 = vmatprep.subr.bf16.mxu0 %v703_v0 }
  0x72   :  { %549 = vmatpush3.bf16.msra.mxu0 %v586_v34 }
 0x115   :  { %v188_v26 = vpop.f32.mrf.mxu0 }
 0x116   :  { %v189_v27 = vadd.f32 %v440_v25, %v188_v26 }
 0x117   :  { %v512_v28 = vpop.f32.mrf.mxu0 }
 0x118   :  { %v194_v29 = vmax.f32 %v189_v27, 0.0 }
 0x119   :  { %v191_v30 = vpop.f32.mrf.mxu0 }
 0x11a   :  { %v195_v31 = vpack.c.bf16 %v194_v29, %v194_v29 }
 0x11b   :  { %v513_v32 = vpop.f32.mrf.mxu0 }
 0x11c   :  { %531 = vmatmul.mubr.bf16.vlgmr.msra.gmra.mxu1 %v195_v31 }
 0x1dc   :  { %v301_v36 = vpop.f32.mrf.mxu1 }
 0x1dd   :  { %v302_v37 = vadd.f32 %v449_v35, %v301_v36 }
 0x1de   :  { %v532_v38 = vpop.f32.mrf.mxu1 }
 0x1df   :  { %v307_v39 = vmax.f32 %v302_v37, 0.0 }
 0x1e0   :  { %v304_v40 = vpop.f32.mrf.mxu1 }
 0x1e1   :  { %v308_v41 = vpack.c.bf16 %v307_v39, %v307_v39 }
 0x1e2   :  { %v533_v42 = vpop.f32.mrf.mxu1 }
 0x1e3   :  { %551 = vmatmul.mubr.bf16.vlgmr.msra.gmra.mxu0 %v308_v41 }
 0x2a3   :  { %v414_v44 = vpop.f32.mrf.mxu0 }
 0x2a4   :  { %v415_v45 = vadd.f32 %v458_v43, %v414_v44 }
 0x2a5   :  { %v552_v46 = vpop.f32.mrf.mxu0 }
 0x2a6   :  { %587 = vtanh.f32 %v415_v45 }
 0x2a7   :  { %v417_v47 = vpop.f32.mrf.mxu0 }
 0x2a9   :  { %v553_v48 = vpop.f32.mrf.mxu0 }
 0x2b3   :  { %v588_v49 = vpop.eup %587 }
 0x2b4   :  { %v421_v50 = vmul.f32 2.0, %v588_v49 }
 0x2b6   :  { %422 = vst [vmem:[#allocation10] sm:$0xff] %v421_v50 }
 0x2b7   :  { %680 = shalt.err (!%p677_p10)
}
 0x2b8   :  { %432 = dma.vmem_to_hbm [thread:$0]  %s430_s4, 128, %s816_s7, [#allocation4]  }
 0x2b9   :  { %695 = dma.done.wait [#allocation4], 128  }
 0x2ba   :  { %696 = vsyncadd [#allocation4], 4294967168 }
 0x2bb   :  { %436 = vsyncpa [#allocation3], 1 }
 0x2bc   :  { %437 = vsyncpa [#allocation6], 1 }
 0x2bd   :  { %438 = vsyncpa [#allocation9], 1 }
 0x2be   :  { %439 = vsyncpa [#allocation4], 1 }

</bundles_post_ra>
